<compile_context>
chip_gen: v5e
topology: v5e:2x2
jax: 0.10.0
libtpu: 0.0.40
codegen_flags: <defaults>
</compile_context>

<pallas_src>
import jax
import jax.numpy as jnp
from jax.experimental import pallas as pl
from jax.experimental.pallas import tpu as pltpu


def build_splits(parameter_sizes, split_policy="chunk", chunk_size=None):
    """Python mirror of Weight_Split.build_splits (chunk policy)."""
    if split_policy == "chunk":
        total_n_params = sum(parameter_sizes)
        num = total_n_params // chunk_size
        splits = [chunk_size] * num
        remainder = total_n_params % chunk_size
        if remainder > 0:
            splits.append(remainder)
    return splits


def _copy_kernel(x_ref, o_ref):
    """One aligned (tb, tn) tile per grid step: pure unmasked vld/vst copy."""
    o_ref[...] = x_ref[...]


def _default_block_bytes():
    """Per-generation block-size target (4 live buffers stay inside scoped VMEM)."""
    try:
        kind = jax.devices()[0].device_kind.lower()
    except Exception:
        return 2 << 20
    if "v7" in kind or "v6" in kind:
        return 4 << 20   # 4 bufs x 4 MiB = 16 MiB << 32 MiB default scoped VMEM
    return 2 << 20       # v5e and unknown: 4 bufs x 2 MiB = 8 MiB << 16 MiB


def _pick_tiles_2d(B, N, itemsize, target_block_bytes):
    """Choose (tb, tn) for flat blocks of shape (tb, tn) over the (B, N) view.

    Legality: tn is a multiple of 128 or the full N; tb is a multiple of the
    dtype-dependent sublane granule (8 for 4-byte, 16 for 2-byte, 32 for
    1-byte) or the full B.  Preference order:
      1. block fits target_block_bytes,
      2. grid has an even number (>= 2) of blocks (feeds both v7x TCs),
      3. largest fitting block (amortize ~0.35 us per-grid-step overhead),
      4. widest lane dimension (lane-dense stores).
    """
    granule = {4: 8, 2: 16, 1: 32}.get(itemsize, 8)

    def cands(n, g):
        c = {n}  # full extent is always legal
        c.update(d for d in range(g, n, g) if n % d == 0)
        return sorted(c)

    best = None
    for tb in cands(B, granule):
        for tn in cands(N, 128):
            nbytes = tb * tn * itemsize
            fits = nbytes <= target_block_bytes
            nblocks = (B // tb) * (N // tn)
            even_multi = (nblocks >= 2) and (nblocks % 2 == 0)
            key = (
                not fits,                       # fitting blocks first
                not even_multi,                 # even >=2 blocks for 2 TCs
                -nbytes if fits else nbytes,    # largest fitting block
                -tn,                            # widest lane dimension
            )
            if best is None or key < best[0]:
                best = (key, tb, tn)
    return best[1], best[2]


def weight_split_forward(x, splits, *, use_pallas=False, target_block_bytes=None):
    """Implementation of Weight_Split.forward (encode_parameters).

    Default path (`use_pallas=False`) is the free metadata reshape.  The
    Pallas path is a lane-dense tiled HBM copy intended as a fusion anchor.
    """
    # torch.stack requires equal-size chunks (total % chunk_size == 0); a
    # remainder chunk would make the PyTorch module fail too.
    assert len(splits) > 0 and len(set(splits)) == 1, \
        "encode_parameters requires equal-size chunks (total % chunk_size == 0)"
    B, N = x.shape
    T = len(splits)
    D = splits[0]
    assert T * D == N, "splits must cover the full parameter dimension"

    if not use_pallas:
        # Contiguous equal-chunk split + stack == reshape: zero HBM traffic.
        return x.reshape(B, T, D)

    if target_block_bytes is None:
        target_block_bytes = _default_block_bytes()

    itemsize = jnp.dtype(x.dtype).itemsize
    tb, tn = _pick_tiles_2d(B, N, itemsize, target_block_bytes)
    grid = (B // tb, N // tn)

    out_flat = pl.pallas_call(
        _copy_kernel,
        out_shape=jax.ShapeDtypeStruct((B, N), x.dtype),
        grid=grid,
        in_specs=[pl.BlockSpec((tb, tn), lambda i, j: (i, j))],
        out_specs=pl.BlockSpec((tb, tn), lambda i, j: (i, j)),
        compiler_params=pltpu.CompilerParams(
            dimension_semantics=("parallel", "parallel")),
        cost_estimate=pl.CostEstimate(
            flops=0, transcendentals=0, bytes_accessed=2 * B * N * itemsize),
    )(x)

    # Metadata-only view change after the lane-dense copy.
    return out_flat.reshape(B, T, D)


if __name__ == "__main__":
    def _run_case(B, parameter_sizes, chunk_size, key):
        splits = build_splits(parameter_sizes, chunk_size=chunk_size)
        N = sum(parameter_sizes)
        x = jax.random.normal(key, (B, N), dtype=jnp.float32)
        T, D = len(splits), splits[0]
        ref = x.reshape(B, T, D)  # exact reference for split(dim=1)+stack(dim=1)

        # Pallas path (fusion / data-movement anchor).
        out = jax.block_until_ready(
            weight_split_forward(x, splits, use_pallas=True))
        assert out.shape == (B, T, D), (out.shape, (B, T, D))
        assert out.dtype == x.dtype
        assert jnp.array_equal(out, ref), "Pallas output mismatch vs reference"

        # Production default path (metadata-only reshape).
        out2 = jax.block_until_ready(weight_split_forward(x, splits))
        assert jnp.array_equal(out2, ref), "reshape path mismatch vs reference"

    key = jax.random.PRNGKey(0)
    k1, k2 = jax.random.split(key)

    # Case 1: small shapes consistent with the module (chunk_size=128):
    # parameter sizes sum to 512 -> T=4 chunks of D=128, B=8.
    _run_case(B=8, parameter_sizes=[200, 312], chunk_size=128, key=k1)

    # Case 2: module-default chunk_size=512: B=8, N=4096 -> T=8, D=512;
    # exercises a multi-block lane-dense grid on the flat (B, N) view.
    _run_case(B=8, parameter_sizes=[2048, 2048], chunk_size=512, key=k2)

    print("KERNEL_OK")
</pallas_src>

<mosaic_0001>
module attributes {stable_mosaic.version = 11 : i64} {
  func.func @_copy_kernel(%arg0: i32, %arg1: i32, %arg2: memref<8x256xf32, #tpu.memory_space<vmem>>, %arg3: memref<8x256xf32, #tpu.memory_space<vmem>>) attributes {dimension_semantics = [#tpu.dimension_semantics<parallel>, #tpu.dimension_semantics<parallel>], iteration_bounds = array<i64: 1, 2>, scalar_prefetch = 0 : i64, scratch_operands = 0 : i64, tpu.core_type = #tpu.core_type<tc>, window_params = [{transform_indices = @transform_0, window_bounds = array<i64: 8, 256>}, {transform_indices = @transform_1, window_bounds = array<i64: 8, 256>}]} {
    %c0 = arith.constant 0 : index
    %c0_0 = arith.constant 0 : index
    %0 = vector.load %arg2[%c0, %c0_0] : memref<8x256xf32, #tpu.memory_space<vmem>>, vector<8x256xf32>
    %c0_1 = arith.constant 0 : index
    %c0_2 = arith.constant 0 : index
    %1 = vector.load %arg3[%c0_1, %c0_2] : memref<8x256xf32, #tpu.memory_space<vmem>>, vector<8x256xf32>
    tpu.vector_store %arg3[%c0_1, %c0_2], %0 {strides = array<i32>} : memref<8x256xf32, #tpu.memory_space<vmem>>, vector<8x256xf32>,
    return
  }
  func.func @transform_0(%arg0: i32, %arg1: i32) -> (i32, i32) {
    %c0_i32 = arith.constant 0 : i32
    return %arg0, %arg1 : i32, i32
  }
  func.func @transform_1(%arg0: i32, %arg1: i32) -> (i32, i32) {
    %c0_i32 = arith.constant 0 : i32
    return %arg0, %arg1 : i32, i32
  }
}

</mosaic_0001>

<bundles_post_ra>
// kernel: tpu_custom_call.1
= control target key start
LH: loop header
LB: loop body
LE: loop exit
PB: predicated region body
PF: predicated region fallthrough
CT: control target
= control target key end

     0   :  { %6 = vsyncpa [#allocation3], 0  ;;  %s585_s0 = inlined_call_operand.hbm [shape: f32[8,512], index: 0, kind: input, shape index: {}]   ;;  %s586_s1 = inlined_call_operand.hbm [shape: f32[8,512], index: 1, kind: output, shape index: {}]  }
   0x1   :  { %8 = vsyncpa [#allocation3 + $0x1], 0 }
   0x2   :  { %9 = vsyncpa [#allocation4], 0 }
   0x3   :  { %11 = vsyncpa [#allocation4 + $0x1], 0  ;;  %s465_s6 = smov 0   ;;  %s467_s7 = smov 0  }
   0x4   :  { %s469_s8 = smov 0   ;;  %s471_s9 = smov 0  }
   0x5   :  { %s473_s10 = smov 0   ;;  %s475_s11 = smov 0  }
   0x6 LB: > { %s262_s12 = sadd.s32 4294967295, %s453_s11   ;;  %s263_s13 = sadd.s32 4294967294, %s453_s11   ;;  %s453_s11 = sphi %s475_s11, %s17_s11   ;;  %s449_s10 = sphi %s473_s10, %s595_s10   ;;  %s445_s9 = sphi %s471_s9, %s594_s9   ;;  %s441_s8 = sphi %s469_s8, %s593_s8   ;;  %s437_s7 = sphi %s467_s7, %s592_s7   ;;  %s433_s6 = sphi %s465_s6, %s591_s6  }
   0x7   : > { %s26_s14 = sadd.s32 1, %s449_s10  ;;  %s38_s15 = sadd.s32 1, %s441_s8 }
   0x8   : > { %p27_p0 = scmp.ge.s32.totalorder %s26_s14, 2  ;;  %p45_p1 = scmp.ne.s32.totalorder %s441_s8, %s437_s7 }
   0x9   : > { %p46_p2 = scmp.eq.s32.totalorder %s453_s11, 0  ;;  %p51_p3 = scmp.ne.s32.totalorder %s437_s7, %s433_s6 }
   0xa   : > { %s597_s14 = smov (%p27_p0, %s26_s14), 0  ;;  %p52_p5 = scmp.eq.s32.totalorder %s262_s12, 0 }
   0xb   : > { %p506_p4 = por %p46_p2, %p45_p1  ;;  %s34_s17 = ssub.s32 %s449_s10, %s597_s14 }
   0xc   : > { %p77_p6 = scmp.eq.s32.totalorder %s262_s12, 1  ;;  %p36_p7 = scmp.eq.s32.totalorder %s34_s17, 0 }
   0xd   : > { %p512_p8 = por %p52_p5, %p51_p3  ;;  %p83_p10 = scmp.eq.s32.totalorder %s263_s13, 1 }
   0xe   : > { %p516_p9 = por %p77_p6, %p45_p1  ;;  %p265_p12 = scmp.ge.s32.totalorder %s453_s11, 2 }
   0xf   : > { %s521_s20 = scalar_select %p36_p7, %s441_s8, %s38_s15  }
  0x10   : > { %p523_p11 = por %p83_p10, %p51_p3  ;;  %p291_p13 = scmp.lt.s32.totalorder %s453_s11, 2 }
  0x11   : > { %s103_s22 = sand.u32 1, %s441_s8   ;;  %s277_s24 = sshll.u32 %s449_s10, 4 }
  0x12   : > { %s266_s23 = sshll.u32 %s103_s22, 4  ;;  %s114_s27 = scalar_lea.hbm %s585_s0, %s277_s24 }
  0x13   : > { %s107_s28 = scalar_lea.vmem [#allocation2], %s266_s23  ;;  %s116_s30 = sshll.u32 %s114_s27, 4  ;;  %s117_s30 = int_to_ptr.hbm [resolvable:$true] %s116_s30 }
  0x14   : > { %s118_s29 = sshll.u32 %s107_s28, 4  ;;  %p284_p0 = pnand %p291_p13, %p506_p4  ;;  %s119_s29 = int_to_ptr.vmem [resolvable:$true] %s118_s29 }
  0x15   : > { %p269_p1 = scmp.ge.s32.totalorder %s453_s11, 1  ;;  %p123_p2 = scmp.lt.s32.totalorder %s453_s11, 3 }
  0x16   : > { %s104_s2 = scalar_lea.sflag [#allocation3], %s103_s22 }
  0x17   : > { %286 = dma.hbm_to_vmem [thread:$0]  (!%p284_p0), %s117_s30, 256, %s119_s29, %s104_s2  }
  0x18   : > { %p124_p3 = pnand %p269_p1, %p123_p2 }
  0x19   : > { %s539_s3 = sand.u32 (!%p124_p3), 1, %s437_s7  }
  0x1a   : > { %127 = sbr.rel (%p124_p3) target bundleno = 47 (0x2f), region = 24  ;;  %s270_s4 = sshll.u32 (!%p124_p3), %s539_s3, 4 }
  0x1b   : > { %s130_s5 = scalar_lea.sflag (!%p124_p3), [#allocation3], %s539_s3  ;;  %s133_s12 = scalar_lea.vmem (!%p124_p3), [#allocation2], %s270_s4 }
  0x1f   : > { %424 = dma.done.wait (%p512_p8), %s130_s5, 256  }
  0x20   : > { %426 = vsyncadd (%p512_p8), %s130_s5, 4294967040  ;;  %s278_s13 = sshll.u32 %s445_s9, 4  ;;  %s152_s22 = scalar_lea.vmem [#allocation5], %s270_s4  ;;  %v155_v0 = vld [vmem:[%s133_s12] sm:$0xff]  ;;  %v156_v1 = vld [vmem:[%s133_s12 + $0x8] sm:$0xff] }
  0x21   : > { %s173_s17 = scalar_lea.hbm %s586_s1, %s278_s13  ;;  %s175_s23 = sshll.u32 %s152_s22, 4  ;;  %157 = vst [vmem:[%s152_s22] sm:$0xff] %v155_v0  ;;  %s176_s23 = int_to_ptr.vmem [resolvable:$true] %s175_s23 }
  0x22   : > { %s177_s24 = sshll.u32 %s173_s17, 4  ;;  %158 = vst [vmem:[%s152_s22 + $0x8] sm:$0xff] %v156_v1  ;;  %s160_s25 = scalar_lea.sflag [#allocation4], %s539_s3  ;;  %s178_s24 = int_to_ptr.hbm [resolvable:$true] %s177_s24 }
  0x23   : > { %s385_s18 = sshra.s32 %s178_s24, 4  ;;  %s391_s28 = scalar_lea.hbm %s586_s1, 32  ;;  %s386_s18 = int_to_ptr.hbm [resolvable:$true] %s385_s18 }
  0x24   : > { %s387_s26 = scalar_lea.hbm %s386_s18, 16  ;;  %p392_p7 = scmp.lt.s32.totalorder %s386_s18, %s586_s1 }
  0x25   : > { %p388_p4 = scmp.ne.s32.totalorder %s386_s18, %s387_s26  ;;  %p393_p8 = scmp.lt.s32.totalorder %s391_s28, %s387_s26 }
  0x27   : > { %p389_p5 = pnand %p388_p4, %p516_p9  ;;  %p394_p10 = por %p393_p8, %p392_p7 }
  0x29   : > { %p390_p6 = pneg %p389_p5 }
  0x2b   : > { %p395_p13 = pnand %p394_p10, %p390_p6 }
  0x2d   : > { %398 = shalt.err (!%p395_p13)
}
  0x2e   : > { %281 = dma.vmem_to_hbm [thread:$0]  (%p516_p9), %s176_s23, 256, %s178_s24, %s160_s25  }
  0x2f PF: > { %s189_s2 = sand.u32 1, %s433_s6   ;;  %p288_p0 = pnand %p265_p12, %p523_p11 }
  0x30   : > { %s190_s3 = scalar_lea.sflag [#allocation4], %s189_s2 }
  0x31   : > { %p289_p1 = pneg %p288_p0 }
  0x33   : > { %428 = dma.done.wait (%p289_p1), %s190_s3, 256  }
  0x34   : > { %430 = vsyncadd (%p289_p1), %s190_s3, 4294967040  ;;  %s17_s11 = sadd.s32 1, %s453_s11   ;;  %s591_s6 = smov %s437_s7 }
  0x35   : > { %p14_p2 = scmp.ge.s32.totalorder %s17_s11, 4   ;;  %s592_s7 = smov %s441_s8 }
  0x36   : > { %s593_s8 = smov %s521_s20  ;;  %s594_s9 = smov %s449_s10 }
  0x37   : > { %s595_s10 = smov %s597_s14  ;;  %16 = sbr.rel (!%p14_p2) target bundleno = 6 (0x6), region = 69 }
  0x3c   :  { %196 = vsyncpa [#allocation3], 1 }
  0x3d   :  { %198 = vsyncpa [#allocation3 + $0x1], 1 }
  0x3e   :  { %199 = vsyncpa [#allocation4], 1 }
  0x3f   :  { %201 = vsyncpa [#allocation4 + $0x1], 1 }

</bundles_post_ra>
